<compile_context>
chip_gen: v7x
topology: tpu7x:2x2x1
jax: 0.10.0
libtpu: 0.0.40
codegen_flags: <defaults>
</compile_context>

<pallas_src>
import functools

import jax
import jax.numpy as jnp
from jax import lax
from jax.experimental import pallas as pl
from jax.experimental.pallas import tpu as pltpu

_LANE = 128


# ---------------------------------------------------------------------------
# Parameter lowering: Conv1d (Cout, Cin, K) -> dense conv matrix
# ---------------------------------------------------------------------------
def _conv_matrix(w, lin, stride, padding):
    """Dense matrix M (Cout*Lout, Cin*Lin) acting on the flattened UNPADDED input.

    M[co*Lout + lo, ci*Lin + l] = w[co, ci, l - stride*lo + padding]
                                  if that tap index is in [0, K), else 0.
    Zero padding and stride are absorbed into M's sparsity pattern.
    """
    cout, cin, k = w.shape
    lout = (lin + 2 * padding - k) // stride + 1
    lo = jnp.arange(lout)
    ll = jnp.arange(lin)
    tap = ll[None, :] - stride * lo[:, None] + padding          # (Lout, Lin)
    valid = (tap >= 0) & (tap < k)
    m = w[:, :, jnp.clip(tap, 0, k - 1)]                        # (Cout, Cin, Lout, Lin)
    m = jnp.where(valid[None, None], m, 0.0)
    m = jnp.transpose(m, (0, 2, 1, 3)).reshape(cout * lout, cin * lin)
    return m, lout


def _choose_batch_block(n, *, max_lanes=4096):
    """Per-grid-step batch width (lane extent).

    - multiple of 128 so all loads/stores are lane-dense (no masked vst),
    - big enough to amortize the ~0.35us per-grid-step overhead,
    - capped so double-buffered in/out blocks stay well inside scoped VMEM on
      every generation (incl. v7x's smaller VMEM),
    - >= 2 grid blocks when there is more than one lane-group of work so both
      v7x TensorCores get a share under dimension_semantics=("parallel",).
    """
    groups = pl.cdiv(n, _LANE)
    max_groups = max(1, max_lanes // _LANE)
    blk_groups = 1 if groups <= 1 else min(max_groups, pl.cdiv(groups, 2))
    bn = blk_groups * _LANE
    n_pad = pl.cdiv(n, bn) * bn
    return bn, n_pad


# ---------------------------------------------------------------------------
# Fused kernel: all Conv1d+ReLU layers for one batch block per grid step
# ---------------------------------------------------------------------------
def _fused_cnn_kernel(*refs, num_layers):
    """out = relu(M_L @ ... relu(M_1 @ X + b_1) ... + b_L)   (batch on lanes).

    refs = (x_ref, m1_ref, b1_ref, m2_ref, b2_ref, ..., o_ref)
      x_ref: (Cin*Lin, BN)                    lane-dense input block
      m_ref: (Cout_l*Lout_l, Cin_l*Lin_l)     dense conv matrix (taps/stride/pad folded)
      b_ref: (Cout_l*Lout_l, 1)
      o_ref: (Cout_last*Lout_last, BN)        lane-dense output block
    """
    x_ref, o_ref = refs[0], refs[-1]
    wb = refs[1:-1]

    h = x_ref[...]                              # intermediate never leaves VMEM
    for li in range(num_layers):
        m = wb[2 * li][...]
        b = wb[2 * li + 1][...]
        acc = jnp.dot(m, h.astype(m.dtype), preferred_element_type=jnp.float32)
        h = jnp.maximum(acc + b, 0.0)
    o_ref[...] = h.astype(o_ref.dtype)


# ---------------------------------------------------------------------------
# Wrapper (public API matches PyTorch: x is NCL = (batch, nx, rho))
# ---------------------------------------------------------------------------
def lstm_cnn1d_forward(x_ncl, params, *, stride=(2, 1), padding=(1, 1),
                       compute_dtype=jnp.float32, max_block_lanes=4096):
    """Forward of LstmCnn1d (poolOpt=None): fused stack of Conv1d+ReLU layers.

    x_ncl:  (N, nx, rho)
    params: [(w, b), ...] with w in PyTorch layout (Cout, Cin, K), b (Cout,)
    returns (N, nkernel[-1], L_out) in NCL layout (same as PyTorch).
    """
    n, cin, length = x_ncl.shape

    # ---- one-off parameter lowering (tiny, not per-activation work) --------
    mats = []
    lin = length
    for (w, b), st, pd in zip(params, stride, padding):
        m, lout = _conv_matrix(w, lin, st, pd)
        bias = jnp.repeat(b, lout).reshape(-1, 1).astype(jnp.float32)
        mats.append((m.astype(compute_dtype), bias))
        lin = lout
    cout_last = params[-1][0].shape[0]
    lout_last = lin
    rows_in = cin * length
    rows_out = cout_last * lout_last

    # ---- layout plumbing: batch onto the lane axis -------------------------
    bn, n_pad = _choose_batch_block(n, max_lanes=max_block_lanes)
    x_flat = x_ncl.reshape(n, rows_in).T.astype(compute_dtype)   # (Cin*Lin, N)
    if n_pad != n:
        x_flat = jnp.pad(x_flat, ((0, 0), (0, n_pad - n)))
    grid = n_pad // bn

    flat_inputs = [x_flat]
    in_specs = [pl.BlockSpec((rows_in, bn), lambda i: (0, i))]
    for m, bias in mats:
        flat_inputs += [m, bias]
        in_specs += [pl.BlockSpec(m.shape, lambda i: (0, 0)),     # DMA'd once
                     pl.BlockSpec(bias.shape, lambda i: (0, 0))]

    flops = n_pad * sum(2 * m.shape[0] * (m.shape[1] + 1) for m, _ in mats)
    bytes_accessed = (x_flat.size * x_flat.dtype.itemsize
                      + rows_out * n_pad * 4
                      + sum(m.size * m.dtype.itemsize + bias.size * 4
                            for m, bias in mats))

    kernel = functools.partial(_fused_cnn_kernel, num_layers=len(mats))

    out_flat = pl.pallas_call(
        kernel,
        out_shape=jax.ShapeDtypeStruct((rows_out, n_pad), jnp.float32),
        grid=(grid,),
        in_specs=in_specs,
        out_specs=pl.BlockSpec((rows_out, bn), lambda i: (0, i)),
        compiler_params=pltpu.CompilerParams(
            dimension_semantics=("parallel",),           # batch blocks shard across TCs
            vmem_limit_bytes=32 * 1024 * 1024),
        cost_estimate=pl.CostEstimate(flops=flops, transcendentals=0,
                                      bytes_accessed=bytes_accessed),
    )(*flat_inputs)

    # ---- back to the PyTorch NCL output layout ------------------------------
    return out_flat[:, :n].T.reshape(n, cout_last, lout_last)


# ---------------------------------------------------------------------------
# Params + pure-JAX reference
# ---------------------------------------------------------------------------
def init_params(key, nx, nkernel=(10, 5), kernel_size=(3, 3)):
    """Deterministic PyTorch-Conv1d-style uniform init (no checkpoint load)."""
    params = []
    cin = nx
    for cout, ks in zip(nkernel, kernel_size):
        key, kw, kb = jax.random.split(key, 3)
        bound = 1.0 / float(cin * ks) ** 0.5
        w = jax.random.uniform(kw, (cout, cin, ks), jnp.float32, -bound, bound)
        b = jax.random.uniform(kb, (cout,), jnp.float32, -bound, bound)
        params.append((w, b))
        cin = cout
    return params


def _reference_forward(x_ncl, params, stride, padding):
    """Pure-JAX reference (lax conv) for correctness checking."""
    h = x_ncl
    for (w, b), st, pd in zip(params, stride, padding):
        h = lax.conv_general_dilated(
            h, w, window_strides=(st,), padding=[(pd, pd)],
            dimension_numbers=("NCH", "OIH", "NCH"))
        h = jnp.maximum(h + b[None, :, None], 0.0)
    return h


if __name__ == "__main__":
    # Module config: nx=4 input channels, rho=16 sequence length, batch=2.
    nx, rho, batch = 4, 16, 2
    nkernel, kernel_size, stride, padding = (10, 5), (3, 3), (2, 1), (1, 1)

    key = jax.random.PRNGKey(0)
    key, kx = jax.random.split(key)
    x = jax.random.normal(kx, (batch, nx, rho), dtype=jnp.float32)  # NCL
    params = init_params(key, nx, nkernel, kernel_size)

    out = lstm_cnn1d_forward(x, params, stride=stride, padding=padding)
    out = jax.block_until_ready(out)

    ref = jax.block_until_ready(_reference_forward(x, params, stride, padding))
    assert out.shape == ref.shape, (out.shape, ref.shape)
    assert jnp.allclose(out, ref, atol=1e-5, rtol=1e-5)

    print("KERNEL_OK")
</pallas_src>

<mosaic_0001>
module attributes {stable_mosaic.version = 11 : i64} {
  func.func @_fused_cnn_kernel(%arg0: i32, %arg1: memref<64x128xf32, #tpu.memory_space<vmem>>, %arg2: memref<80x64xf32, #tpu.memory_space<vmem>>, %arg3: memref<80x1xf32, #tpu.memory_space<vmem>>, %arg4: memref<40x80xf32, #tpu.memory_space<vmem>>, %arg5: memref<40x1xf32, #tpu.memory_space<vmem>>, %arg6: memref<40x128xf32, #tpu.memory_space<vmem>>) attributes {dimension_semantics = [#tpu.dimension_semantics<parallel>], iteration_bounds = array<i64: 1>, scalar_prefetch = 0 : i64, scratch_operands = 0 : i64, tpu.core_type = #tpu.core_type<tc>, window_params = [{transform_indices = @transform_0, window_bounds = array<i64: 64, 128>}, {pipeline_mode = #tpu.pipeline_mode<synchronous>, transform_indices = @transform_1, window_bounds = array<i64: 80, 64>}, {pipeline_mode = #tpu.pipeline_mode<synchronous>, transform_indices = @transform_2, window_bounds = array<i64: 80, 1>}, {pipeline_mode = #tpu.pipeline_mode<synchronous>, transform_indices = @transform_3, window_bounds = array<i64: 40, 80>}, {pipeline_mode = #tpu.pipeline_mode<synchronous>, transform_indices = @transform_4, window_bounds = array<i64: 40, 1>}, {transform_indices = @transform_5, window_bounds = array<i64: 40, 128>}]} {
    %c0 = arith.constant 0 : index
    %c0_0 = arith.constant 0 : index
    %0 = vector.load %arg1[%c0, %c0_0] : memref<64x128xf32, #tpu.memory_space<vmem>>, vector<64x128xf32>
    %c0_1 = arith.constant 0 : index
    %c0_2 = arith.constant 0 : index
    %1 = vector.load %arg2[%c0_1, %c0_2] : memref<80x64xf32, #tpu.memory_space<vmem>>, vector<80x64xf32>
    %c0_3 = arith.constant 0 : index
    %c0_4 = arith.constant 0 : index
    %2 = vector.load %arg3[%c0_3, %c0_4] : memref<80x1xf32, #tpu.memory_space<vmem>>, vector<80x1xf32>
    %cst = arith.constant dense<0.000000e+00> : vector<80x128xf32>
    %3 = tpu.matmul %1, %0, %cst {dimension_numbers = #tpu.dot_dimension_numbers<[1], [0], [0], [1], [0, 0, 1, 1], [], []>} : vector<80x64xf32>, vector<64x128xf32>, vector<80x128xf32> -> vector<80x128xf32>
    %4 = vector.broadcast %2 : vector<80x1xf32> to vector<80x128xf32>
    %5 = arith.addf %3, %4 : vector<80x128xf32>
    %cst_5 = arith.constant 0.000000e+00 : f32
    %6 = vector.broadcast %cst_5 : f32 to vector<80x128xf32>
    %7 = arith.maximumf %5, %6 : vector<80x128xf32>
    %c0_6 = arith.constant 0 : index
    %c0_7 = arith.constant 0 : index
    %8 = vector.load %arg4[%c0_6, %c0_7] : memref<40x80xf32, #tpu.memory_space<vmem>>, vector<40x80xf32>
    %c0_8 = arith.constant 0 : index
    %c0_9 = arith.constant 0 : index
    %9 = vector.load %arg5[%c0_8, %c0_9] : memref<40x1xf32, #tpu.memory_space<vmem>>, vector<40x1xf32>
    %cst_10 = arith.constant dense<0.000000e+00> : vector<40x128xf32>
    %10 = tpu.matmul %8, %7, %cst_10 {dimension_numbers = #tpu.dot_dimension_numbers<[1], [0], [0], [1], [0, 0, 1, 1], [], []>} : vector<40x80xf32>, vector<80x128xf32>, vector<40x128xf32> -> vector<40x128xf32>
    %11 = vector.broadcast %9 : vector<40x1xf32> to vector<40x128xf32>
    %12 = arith.addf %10, %11 : vector<40x128xf32>
    %cst_11 = arith.constant 0.000000e+00 : f32
    %13 = vector.broadcast %cst_11 : f32 to vector<40x128xf32>
    %14 = arith.maximumf %12, %13 : vector<40x128xf32>
    %c0_12 = arith.constant 0 : index
    %c0_13 = arith.constant 0 : index
    %15 = vector.load %arg6[%c0_12, %c0_13] : memref<40x128xf32, #tpu.memory_space<vmem>>, vector<40x128xf32>
    tpu.vector_store %arg6[%c0_12, %c0_13], %14 {strides = array<i32>} : memref<40x128xf32, #tpu.memory_space<vmem>>, vector<40x128xf32>,
    return
  }
  func.func @transform_0(%arg0: i32) -> (i32, i32) {
    %c0_i32 = arith.constant 0 : i32
    %c0_i32_0 = arith.constant 0 : i32
    return %c0_i32, %arg0 : i32, i32
  }
  func.func @transform_1(%arg0: i32) -> (i32, i32) {
    %c0_i32 = arith.constant 0 : i32
    %c0_i32_0 = arith.constant 0 : i32
    %c0_i32_1 = arith.constant 0 : i32
    return %c0_i32, %c0_i32_0 : i32, i32
  }
  func.func @transform_2(%arg0: i32) -> (i32, i32) {
    %c0_i32 = arith.constant 0 : i32
    %c0_i32_0 = arith.constant 0 : i32
    %c0_i32_1 = arith.constant 0 : i32
    return %c0_i32, %c0_i32_0 : i32, i32
  }
  func.func @transform_3(%arg0: i32) -> (i32, i32) {
    %c0_i32 = arith.constant 0 : i32
    %c0_i32_0 = arith.constant 0 : i32
    %c0_i32_1 = arith.constant 0 : i32
    return %c0_i32, %c0_i32_0 : i32, i32
  }
  func.func @transform_4(%arg0: i32) -> (i32, i32) {
    %c0_i32 = arith.constant 0 : i32
    %c0_i32_0 = arith.constant 0 : i32
    %c0_i32_1 = arith.constant 0 : i32
    return %c0_i32, %c0_i32_0 : i32, i32
  }
  func.func @transform_5(%arg0: i32) -> (i32, i32) {
    %c0_i32 = arith.constant 0 : i32
    %c0_i32_0 = arith.constant 0 : i32
    return %c0_i32, %arg0 : i32, i32
  }
}

</mosaic_0001>

<bundles_post_ra>
// kernel: tpu_custom_call.1
= control target key start
LH: loop header
LB: loop body
LE: loop exit
PB: predicated region body
PF: predicated region fallthrough
CT: control target
= control target key end

     0   :  { %vm99_vm0 = vcmask 523264   ;;  %v600_v5 = vmov 0   ;;  %s783_s0 = inlined_call_operand.vmem [shape: f32[64,128], index: 0, kind: input, shape index: {}]   ;;  %s784_s1 = inlined_call_operand.vmem [shape: f32[80,64], index: 1, kind: input, shape index: {}]   ;;  %s785_s2 = inlined_call_operand.vmem [shape: f32[80,1], index: 2, kind: input, shape index: {}]   ;;  %s786_s3 = inlined_call_operand.vmem [shape: f32[40,80], index: 3, kind: input, shape index: {}]   ;;  %s787_s4 = inlined_call_operand.vmem [shape: f32[40,1], index: 4, kind: input, shape index: {}]   ;;  %s788_s5 = inlined_call_operand.hbm [shape: f32[40,128], index: 5, kind: output, shape index: {}]  }
   0x1   :  { %v21_v0 = vld [vmem:[%s783_s0] sm:$0xff]  ;;  %v22_v1 = vld [vmem:[%s783_s0 + $0x8] sm:$0xff]  ;;  %v23_v2 = vld [vmem:[%s783_s0 + $0x10] sm:$0xff]  ;;  %574 = vset.pattern.permute.xlu0 %v600_v5  ;;  %575 = vset.pattern.permute.xlu1 %v600_v5 }
   0x2   :  { %v536_v3 = vpack.c.bf16 %v22_v1, %v21_v0  ;;  %v24_v4 = vld [vmem:[%s783_s0 + $0x18] sm:$0xff]  ;;  %v25_v7 = vld [vmem:[%s783_s0 + $0x20] sm:$0xff]  ;;  %v26_v8 = vld [vmem:[%s783_s0 + $0x28] sm:$0xff] }
   0x3   :  { %v540_v6 = vpack.c.bf16 %v24_v4, %v23_v2  ;;  %v29_v9 = vld [vmem:[%s784_s1] sm:$0xff]  ;;  %v544_v10 = vpack.c.bf16 %v26_v8, %v25_v7  ;;  %v27_v11 = vld [vmem:[%s783_s0 + $0x30] sm:$0xff]  ;;  %v28_v12 = vld [vmem:[%s783_s0 + $0x38] sm:$0xff] }
   0x4   :  { %537 = vmatprep.subr.bf16.mxu0 %v536_v3  ;;  %486 = vmatprep.mubr.msk.f32.mxu0 %vm99_vm0, %v29_v9  ;;  %v39_v13 = vld [vmem:[%s785_s2] sm:$0xff]  ;;  %v41_v14 = vld [vmem:[%s785_s2 + $0x10] sm:$0xff]  ;;  %v40_v15 = vld [vmem:[%s785_s2 + $0x8] sm:$0xff]  ;;  %v548_v17 = vpack.c.bf16 %v28_v12, %v27_v11 }
   0x5   :  { %539 = vmatpush3.bf16.msra.mxu0 %v536_v3  ;;  %51 = vperm.xlu0 %574, %v39_v13   ;;  %v42_v16 = vld [vmem:[%s785_s2 + $0x18] sm:$0xff] }
   0x6   :  { %541 = vmatprep.subr.bf16.mxu0 %v540_v6  ;;  %61 = vperm.xlu1 %575, %v41_v14  }
   0x9   :  { %543 = vmatpush3.bf16.msra.mxu0 %v540_v6  ;;  %56 = vperm.xlu0 %574, %v40_v15  }
   0xa   :  { %545 = vmatprep.subr.bf16.mxu0 %v544_v10  ;;  %66 = vperm.xlu1 %575, %v42_v16  }
   0xb   :  { %10 = vsyncpa [#allocation3], 0  ;;  %v43_v18 = vld [vmem:[%s785_s2 + $0x20] sm:$0xff]  ;;  %v44_v19 = vld [vmem:[%s785_s2 + $0x28] sm:$0xff]  ;;  %v601_v38 = vmov 0.0|0.0   ;;  %vm602_vm1 = vmmov 0  }
   0xc   :  { %v30_v20 = vld [vmem:[%s784_s1 + $0x8] sm:$0xff]  ;;  %v45_v21 = vld [vmem:[%s785_s2 + $0x30] sm:$0xff]  ;;  %v46_v23 = vld [vmem:[%s785_s2 + $0x38] sm:$0xff]  ;;  %552 = vmatprep.subr.bf16.mxu1 %v601_v38  ;;  %v603_v39 = vmov 0.0   ;;  %vm290_vm2 = vcmask 654336  }
   0xd   :  { %547 = vmatpush3.bf16.msra.mxu0 %v544_v10  ;;  %71 = vperm.xlu0 %574, %v43_v18   ;;  %v31_v22 = vld [vmem:[%s784_s1 + $0x10] sm:$0xff]  ;;  %v32_v24 = vld [vmem:[%s784_s1 + $0x18] sm:$0xff]  ;;  %v47_v25 = vld [vmem:[%s785_s2 + $0x40] sm:$0xff] }
   0xe   :  { %549 = vmatprep.subr.bf16.mxu0 %v548_v17  ;;  %76 = vperm.xlu1 %575, %v44_v19   ;;  %v33_v26 = vld [vmem:[%s784_s1 + $0x20] sm:$0xff]  ;;  %v48_v27 = vld [vmem:[%s785_s2 + $0x48] sm:$0xff]  ;;  %v35_v30 = vld [vmem:[%s784_s1 + $0x30] sm:$0xff] }
   0xf   :  { %v34_v28 = vld [vmem:[%s784_s1 + $0x28] sm:$0xff]  ;;  %v260_v29 = vld [vmem:[%s787_s4] sm:$0xff]  ;;  %v36_v32 = vld [vmem:[%s784_s1 + $0x38] sm:$0xff]  ;;  %521 = vmatprep.mubr.msk.f32.mxu1 %vm602_vm1, %v603_v39 }
  0x10   :  { %v261_v31 = vld [vmem:[%s787_s4 + $0x8] sm:$0xff]  ;;  %v262_v33 = vld [vmem:[%s787_s4 + $0x10] sm:$0xff]  ;;  %v37_v34 = vld [vmem:[%s784_s1 + $0x40] sm:$0xff] }
  0x11   :  { %551 = vmatpush3.bf16.msra.mxu0 %v548_v17  ;;  %81 = vperm.xlu0 %574, %v45_v21   ;;  %v263_v35 = vld [vmem:[%s787_s4 + $0x18] sm:$0xff]  ;;  %v38_v36 = vld [vmem:[%s784_s1 + $0x48] sm:$0xff]  ;;  %v264_v37 = vld [vmem:[%s787_s4 + $0x20] sm:$0xff] }
  0x12   :  { %86 = vperm.xlu1 %575, %v46_v23   ;;  %v255_v21 = vld [vmem:[%s786_s3] sm:$0xff]  ;;  %v257_v23 = vld [vmem:[%s786_s3 + $0x10] sm:$0xff] }
  0x14   :  { %487 = vmatmul.mubr.msk.f32.vlgmr.msra.gmra.mrb[0].mxu0 %vm99_vm0, %v30_v20 }
  0x15   :  { %489 = vmatprep.mubr.msk.f32.mxu0 %vm99_vm0, %v31_v22  ;;  %91 = vperm.xlu0 %574, %v47_v25   ;;  %v256_v22 = vld [vmem:[%s786_s3 + $0x8] sm:$0xff]  ;;  %v259_v25 = vld [vmem:[%s786_s3 + $0x20] sm:$0xff] }
  0x16   :  { %96 = vperm.xlu1 %575, %v48_v27  }
  0x18   :  { %490 = vmatmul.mubr.msk.f32.gmra.mrb[2].mxu0 %vm99_vm0, %v32_v24  ;;  %v258_v24 = vld [vmem:[%s786_s3 + $0x18] sm:$0xff]  ;;  %s604_s3 = smov [#allocation2]  }
  0x19   :  { %492 = vmatprep.mubr.msk.f32.mxu0 %vm99_vm0, %v33_v26  ;;  %267 = vperm.xlu0 %574, %v260_v29   ;;  %s411_s14 = sshll.u32 %s604_s3, 4  ;;  %s412_s14 = int_to_ptr.vmem [resolvable:$true] %s411_s14 }
  0x1a   :  { %272 = vperm.xlu1 %575, %v261_v31   ;;  %s576_s15 = scalar_lea.vmem %s412_s14, 640  ;;  %p581_p1 = scmp.lt.s32.totalorder %s412_s14, %s412_s14 }
  0x1b   :  { %p577_p0 = scmp.ne.s32.totalorder %s412_s14, %s576_s15  ;;  %p582_p2 = scmp.lt.s32.totalorder %s576_s15, %s576_s15 }
  0x1c   :  { %493 = vmatmul.mubr.msk.f32.gmra.mrb[4].mxu0 %vm99_vm0, %v34_v28 }
  0x1d   :  { %495 = vmatprep.mubr.msk.f32.mxu0 %vm99_vm0, %v35_v30  ;;  %277 = vperm.xlu0 %574, %v262_v33   ;;  %p583_p3 = por %p582_p2, %p581_p1 }
  0x1e   :  { %282 = vperm.xlu1 %575, %v263_v35  }
  0x1f   :  { %p584_p4 = pnand %p583_p3, %p577_p0 }
  0x20   :  { %496 = vmatmul.mubr.msk.f32.gmra.mrb[6].mxu0 %vm99_vm0, %v36_v32 }
  0x21   :  { %498 = vmatprep.mubr.msk.f32.mxu0 %vm99_vm0, %v37_v34  ;;  %287 = vperm.xlu0 %574, %v264_v37  }
  0x24   :  { %499 = vmatmul.mubr.msk.f32.gmra.mrb[8].mxu0 %vm99_vm0, %v38_v36 }
  0x84   :  { %v52_v41 = vpop.permute.xlu0 %51 }
  0x85   :  { %v62_v40 = vpop.permute.xlu1 %61 }
  0x88   :  { %v57_v43 = vpop.permute.xlu0 %56 }
  0x89   :  { %v67_v42 = vpop.permute.xlu1 %66 }
  0x8c   :  { %v72_v52 = vpop.permute.xlu0 %71 }
  0x8d   :  { %v77_v49 = vpop.permute.xlu1 %76 }
  0x90   :  { %v82_v1 = vpop.permute.xlu0 %81 }
  0x91   :  { %v87_v62 = vpop.permute.xlu1 %86 }
  0x94   :  { %v92_v13 = vpop.permute.xlu0 %91 }
  0x95   :  { %v97_v10 = vpop.permute.xlu1 %96 }
  0x98   :  { %v268_v26 = vpop.permute.xlu0 %267 }
  0x99   :  { %v273_v31 = vpop.permute.xlu1 %272 }
  0x9c   :  { %v278_v36 = vpop.permute.xlu0 %277 }
  0xe7   :  { %v488_v44 = vpop.f32.mrb[0].mxu0 }
  0xe8   :  { %v202_v45 = vadd.f32 %v488_v44, %v57_v43  ;;  %v196_v46 = vpop.f32.mrb[1].mxu0 }
  0xe9   :  { %v197_v47 = vadd.f32 %v196_v46, %v52_v41  ;;  %v283_v41 = vpop.permute.xlu1 %282  ;;  %v288_v46 = vpop.permute.xlu0 %287 }
  0xea   :  { %v246_v48 = vmax.f32 %v202_v45, 0.0 }
  0xeb   :  { %v245_v50 = vmax.f32 %v197_v47, 0.0  ;;  %v491_v51 = vpop.f32.mrb[2].mxu0 }
  0xec   :  { %v212_v53 = vadd.f32 %v491_v51, %v67_v42  ;;  %v206_v54 = vpop.f32.mrb[3].mxu0 }
  0xed   :  { %v207_v55 = vadd.f32 %v206_v54, %v62_v40  ;;  %v553_v56 = vpack.c.bf16 %v246_v48, %v245_v50 }
  0xee   :  { %v248_v57 = vmax.f32 %v212_v53, 0.0 }
  0xef   :  { %v247_v58 = vmax.f32 %v207_v55, 0.0  ;;  %v494_v59 = vpop.f32.mrb[4].mxu0  ;;  %554 = vmatpush3.bf16.msra.mxu1 %v553_v56 }
  0xf0   :  { %v222_v60 = vadd.f32 %v494_v59, %v77_v49  ;;  %v216_v61 = vpop.f32.mrb[5].mxu0  ;;  %555 = vmatprep.subr.bf16.mxu1 %v601_v38 }
  0xf1   :  { %v556_v63 = vpack.c.bf16 %v248_v57, %v247_v58  ;;  %v217_v0 = vadd.f32 %v216_v61, %v72_v52 }
  0xf2   :  { %v250_v2 = vmax.f32 %v222_v60, 0.0 }
  0xf3   :  { %v249_v3 = vmax.f32 %v217_v0, 0.0  ;;  %v497_v4 = vpop.f32.mrb[6].mxu0  ;;  %557 = vmatpush3.bf16.msra.mxu1 %v556_v63 }
  0xf4   :  { %v232_v5 = vadd.f32 %v497_v4, %v87_v62  ;;  %v226_v6 = vpop.f32.mrb[7].mxu0  ;;  %558 = vmatprep.subr.bf16.mxu1 %v601_v38 }
  0xf5   :  { %v559_v7 = vpack.c.bf16 %v250_v2, %v249_v3  ;;  %v227_v8 = vadd.f32 %v226_v6, %v82_v1 }
  0xf6   :  { %v252_v9 = vmax.f32 %v232_v5, 0.0 }
  0xf7   :  { %v251_v11 = vmax.f32 %v227_v8, 0.0  ;;  %v500_v12 = vpop.f32.mrb[8].mxu0  ;;  %560 = vmatpush3.bf16.msra.mxu1 %v559_v7 }
  0xf8   :  { %v242_v14 = vadd.f32 %v500_v12, %v97_v10  ;;  %v236_v15 = vpop.f32.mrb[9].mxu0  ;;  %561 = vmatprep.subr.bf16.mxu1 %v601_v38 }
  0xf9   :  { %v562_v16 = vpack.c.bf16 %v252_v9, %v251_v11  ;;  %v237_v17 = vadd.f32 %v236_v15, %v92_v13 }
  0xfa   :  { %v254_v18 = vmax.f32 %v242_v14, 0.0 }
  0xfb   :  { %v253_v19 = vmax.f32 %v237_v17, 0.0  ;;  %563 = vmatpush3.bf16.msra.mxu1 %v562_v16 }
  0xfc   :  { %564 = vmatprep.subr.bf16.mxu1 %v601_v38 }
  0xfd   :  { %v565_v20 = vpack.c.bf16 %v254_v18, %v253_v19 }
  0xff   :  { %566 = vmatpush3.bf16.msra.mxu1 %v565_v20 }
 0x102   :  { %522 = vmatmul.mubr.msk.f32.vlgmr.msra.gmra.mrb[0].mxu1 %vm290_vm2, %v255_v21 }
 0x103   :  { %524 = vmatprep.mubr.msk.f32.mxu1 %vm602_vm1, %v603_v39 }
 0x106   :  { %525 = vmatmul.mubr.msk.f32.gmra.mrb[2].mxu1 %vm290_vm2, %v256_v22 }
 0x107   :  { %527 = vmatprep.mubr.msk.f32.mxu1 %vm602_vm1, %v603_v39 }
 0x10a   :  { %528 = vmatmul.mubr.msk.f32.gmra.mrb[4].mxu1 %vm290_vm2, %v257_v23 }
 0x10b   :  { %530 = vmatprep.mubr.msk.f32.mxu1 %vm602_vm1, %v603_v39 }
 0x10e   :  { %531 = vmatmul.mubr.msk.f32.gmra.mrb[6].mxu1 %vm290_vm2, %v258_v24 }
 0x10f   :  { %533 = vmatprep.mubr.msk.f32.mxu1 %vm602_vm1, %v603_v39 }
 0x112   :  { %534 = vmatmul.mubr.msk.f32.gmra.mrb[8].mxu1 %vm290_vm2, %v259_v25 }
 0x1d5   :  { %v372_v27 = vpop.f32.mrb[0].mxu1 }
 0x1d6   :  { %v373_v28 = vadd.f32 %v372_v27, %v268_v26  ;;  %v523_v29 = vpop.f32.mrb[1].mxu1 }
 0x1d8   :  { %v396_v30 = vmax.f32 %v373_v28, 0.0 }
 0x1d9   :  { %v377_v32 = vpop.f32.mrb[2].mxu1 }
 0x1da   :  { %401 = vst [vmem:[#allocation2] sm:$0xff] %v396_v30  ;;  %v378_v33 = vadd.f32 %v377_v32, %v273_v31  ;;  %v526_v34 = vpop.f32.mrb[3].mxu1 }
 0x1dc   :  { %v397_v35 = vmax.f32 %v378_v33, 0.0 }
 0x1dd   :  { %v382_v37 = vpop.f32.mrb[4].mxu1 }
 0x1de   :  { %402 = vst [vmem:[#allocation2 + $0x8] sm:$0xff] %v397_v35  ;;  %v383_v38 = vadd.f32 %v382_v37, %v278_v36  ;;  %v529_v39 = vpop.f32.mrb[5].mxu1 }
 0x1e0   :  { %v398_v40 = vmax.f32 %v383_v38, 0.0 }
 0x1e1   :  { %v387_v42 = vpop.f32.mrb[6].mxu1 }
 0x1e2   :  { %403 = vst [vmem:[#allocation2 + $0x10] sm:$0xff] %v398_v40  ;;  %v388_v43 = vadd.f32 %v387_v42, %v283_v41  ;;  %v532_v44 = vpop.f32.mrb[7].mxu1 }
 0x1e4   :  { %v399_v45 = vmax.f32 %v388_v43, 0.0 }
 0x1e5   :  { %v392_v47 = vpop.f32.mrb[8].mxu1 }
 0x1e6   :  { %404 = vst [vmem:[#allocation2 + $0x18] sm:$0xff] %v399_v45  ;;  %v393_v48 = vadd.f32 %v392_v47, %v288_v46  ;;  %v535_v49 = vpop.f32.mrb[9].mxu1 }
 0x1e8   :  { %v400_v50 = vmax.f32 %v393_v48, 0.0 }
 0x1ea   :  { %405 = vst [vmem:[#allocation2 + $0x20] sm:$0xff] %v400_v50 }
 0x1eb   :  { %587 = shalt.err (!%p584_p4)
}
 0x1ec   :  { %s588_s18 = scalar_lea.hbm %s788_s5, 640 }
 0x1ed   :  { %p589_p5 = scmp.ne.s32.totalorder %s788_s5, %s588_s18  ;;  %p592_p6 = scmp.lt.u32.totalorder %s588_s18, %s788_s5 }
 0x1ef   :  { %p594_p7 = pnand %p592_p6, %p589_p5 }
 0x1f1   :  { %597 = shalt.err (!%p594_p7)
}
 0x1f2   :  { %s605_s21 = smov 128   ;;  %s606_s22 = smov 8  }
 0x1f3   :  { %417 = dma.vmem_to_hbm [thread:$0]  %s412_s14, 640, %s788_s5, [#allocation3], %s605_s21, %s605_s21, %s606_s22  }
 0x1f4   :  { %598 = dma.done.wait [#allocation3], 640  }
 0x1f5   :  { %599 = vsyncadd [#allocation3], 4294966656 }
 0x1f6   :  { %421 = vsyncpa [#allocation3], 1 }

</bundles_post_ra>
